<compile_context>
chip_gen: v6e
topology: v6e:2x2x1
jax: 0.10.0
libtpu: 0.0.40
codegen_flags: <defaults>
</compile_context>

<pallas_src>
import jax
import jax.numpy as jnp
import numpy as np
from jax.experimental import pallas as pl
from jax.experimental.pallas import tpu as pltpu


def _global_pool_kernel(h12_ref, h2_ref, wr_ref, br_ref,
                        wa_ref, wb_ref, wc_ref, bh_ref,
                        a2c_ref, b2c_ref, va_ref, vb_ref):
    """Global max-pool feature + pre-folded, pre-centered per-token terms."""
    L, B, H = a2c_ref.shape

    # h_global = max over length of tanh([h_re1 ; h_re2] @ W_r + b_r)
    g_pre = (jnp.dot(h12_ref[...], wr_ref[...],
                     preferred_element_type=jnp.float32) + br_ref[...])
    g = jnp.max(jnp.tanh(g_pre).reshape(L, B, H), axis=0)              # (B, H)

    # cat([r1, r2, g]) @ W_h + b_h == a2[i] + b2[j]
    c2 = (jnp.dot(g, wc_ref[...], preferred_element_type=jnp.float32)
          + bh_ref[...])                                               # (B, H)
    a2 = (jnp.dot(h2_ref[...], wa_ref[...],
                  preferred_element_type=jnp.float32).reshape(L, B, H)
          + c2.reshape(1, B, H))
    b2 = jnp.dot(h2_ref[...], wb_ref[...],
                 preferred_element_type=jnp.float32).reshape(L, B, H)

    # Center over the hidden dim so the pairwise sum a2c[i] + b2c[j] is
    # zero-mean by construction (stage 2 never computes LayerNorm means).
    a2c = a2 - jnp.mean(a2, axis=-1, keepdims=True)
    b2c = b2 - jnp.mean(b2, axis=-1, keepdims=True)
    a2c_ref[...] = a2c
    b2c_ref[...] = b2c
    # Per-token second moments for the pairwise-variance decomposition:
    #   var[i, j] = va[i] + vb[j] + (2/H) * <a2c[i], b2c[j]>
    va_ref[...] = jnp.mean(a2c * a2c, axis=-1, keepdims=True)          # (L, B, 1)
    vb_ref[...] = jnp.mean(b2c * b2c, axis=-1, keepdims=True)          # (L, B, 1)


def _pairwise_kernel(a2_ref, b2_ref, inv_ref, mask_i_ref, mask_j_ref,
                     gamma_ref, beta_ref, wrel_ref, brel_ref, out_ref):
    """One (Ti, Tj) tile of the pairwise relation scores (no slab reductions)."""
    Ti, B, H = a2_ref.shape
    Tj = b2_ref.shape[0]
    R = wrel_ref.shape[1]

    # Zero-mean pairwise hidden slab: one broadcast add.
    diff = (a2_ref[...].reshape(Ti, 1, B, H)
            + b2_ref[...].reshape(1, Tj, B, H))                        # (Ti,Tj,B,H)

    # LayerNorm: inverse std is precomputed -> just scale + affine.
    normed = diff * inv_ref[...]                                       # (Ti,Tj,B,1) bcast
    normed = (normed * gamma_ref[...].reshape(1, 1, 1, H)
              + beta_ref[...].reshape(1, 1, 1, H))

    # dropout: identity (eval mode); ELU(alpha=1)
    act = jnp.where(normed > 0, normed, jnp.expm1(normed))

    # hid2rel + sigmoid
    logits = (jnp.dot(act.reshape(Ti * Tj * B, H), wrel_ref[...],
                      preferred_element_type=jnp.float32) + brel_ref[...])
    re = jax.nn.sigmoid(logits).reshape(Ti, Tj, B, R)

    # pairwise mask: mask[i, b] * mask[j, b], broadcast over relations
    mpair = (mask_i_ref[...].reshape(Ti, 1, B, 1)
             * mask_j_ref[...].reshape(1, Tj, B, 1))
    out_ref[...] = (re * mpair).astype(out_ref.dtype)


def _choose_pair_tile(L, B, H, R, budget_bytes=10 * 1024 * 1024):
    """Largest square tile (multiple of 8 dividing L) whose working set fits."""
    bp = -(-B // 8) * 8             # padded sublane footprint
    hp = -(-H // 128) * 128         # padded lane footprint
    rp = -(-R // 128) * 128
    lanes1 = 128                    # trailing size-1 dims pad to a full lane tile
    cands = [t for t in range(8, L + 1, 8) if L % t == 0] or [L]
    best = cands[0]
    for t in cands:
        slab = (3 * bp + 2 * B) * t * t * hp * 4              # in-kernel temporaries
        io = 2 * (2 * t * bp * hp * 4                         # a2c / b2c blocks
                  + t * t * bp * lanes1 * 4                   # inv-std block
                  + 2 * t * bp * lanes1 * 4                   # mask blocks
                  + t * t * bp * rp * 4)                      # output block
        if slab + io <= budget_bytes:
            best = t
    return best


def re_unit_forward(h_re1, h_re2, mask, params):
    """Pallas forward. h_re1/h_re2: (L, B, H), mask: (L, B) -> (L, L, B, R)."""
    L, B, H = h_re2.shape
    R = params["w_rel"].shape[1]

    w_r = params["w_r"]                              # (2H, H)
    b_r = params["b_r"].reshape(1, H)
    w_h = params["w_h"]                              # (3H, H)
    wa, wb, wc = w_h[:H], w_h[H:2 * H], w_h[2 * H:]
    b_h = params["b_h"].reshape(1, H)
    gamma = params["gamma"].reshape(1, H)
    beta = params["beta"].reshape(1, H)
    w_rel = params["w_rel"]                          # (H, R)
    b_rel = params["b_rel"].reshape(1, R)

    # ---- stage 1: global pooling + pre-folded, pre-centered per-token terms --
    h12 = jnp.concatenate([h_re1, h_re2], axis=-1).reshape(L * B, 2 * H)
    h2f = h_re2.reshape(L * B, H)

    def full_spec(a):
        return pl.BlockSpec(a.shape, lambda: (0,) * a.ndim)

    stage1_args = (h12, h2f, w_r, b_r, wa, wb, wc, b_h)
    a2c, b2c, va, vb = pl.pallas_call(
        _global_pool_kernel,
        out_shape=(jax.ShapeDtypeStruct((L, B, H), jnp.float32),
                   jax.ShapeDtypeStruct((L, B, H), jnp.float32),
                   jax.ShapeDtypeStruct((L, B, 1), jnp.float32),
                   jax.ShapeDtypeStruct((L, B, 1), jnp.float32)),
        in_specs=[full_spec(a) for a in stage1_args],
        out_specs=(pl.BlockSpec((L, B, H), lambda: (0, 0, 0)),
                   pl.BlockSpec((L, B, H), lambda: (0, 0, 0)),
                   pl.BlockSpec((L, B, 1), lambda: (0, 0, 0)),
                   pl.BlockSpec((L, B, 1), lambda: (0, 0, 0))),
    )(*stage1_args)

    # ---- pairwise LayerNorm inverse-std, hoisted out of the O(L^2 H) kernel --
    # var[i,j,b] = va[i,b] + vb[j,b] + (2/H) * <a2c[i,b,:], b2c[j,b,:]>
    cross = jnp.einsum('ibh,jbh->ijb', a2c, b2c,
                       precision=jax.lax.Precision.HIGHEST)            # (L, L, B)
    var = va[:, None, :, 0] + vb[None, :, :, 0] + (2.0 / H) * cross
    inv_std = jax.lax.rsqrt(var + 1e-5).reshape(L, L, B, 1)

    # ---- stage 2: pairwise scores, tiled over both pairwise axes -------------
    T = _choose_pair_tile(L, B, H, R)
    gi, gj = L // T, L // T
    mask3 = mask.reshape(L, B, 1).astype(jnp.float32)

    in_specs = [
        pl.BlockSpec((T, B, H), lambda i, j: (i, 0, 0)),      # a2c rows (i tile)
        pl.BlockSpec((T, B, H), lambda i, j: (j, 0, 0)),      # b2c rows (j tile)
        pl.BlockSpec((T, T, B, 1), lambda i, j: (i, j, 0, 0)),  # inv-std tile
        pl.BlockSpec((T, B, 1), lambda i, j: (i, 0, 0)),      # mask rows i
        pl.BlockSpec((T, B, 1), lambda i, j: (j, 0, 0)),      # mask rows j
        pl.BlockSpec((1, H), lambda i, j: (0, 0)),            # gamma
        pl.BlockSpec((1, H), lambda i, j: (0, 0)),            # beta
        pl.BlockSpec((H, R), lambda i, j: (0, 0)),            # w_rel
        pl.BlockSpec((1, R), lambda i, j: (0, 0)),            # b_rel
    ]
    out = pl.pallas_call(
        _pairwise_kernel,
        out_shape=jax.ShapeDtypeStruct((L, L, B, R), jnp.float32),
        grid=(gi, gj),
        in_specs=in_specs,
        out_specs=pl.BlockSpec((T, T, B, R), lambda i, j: (i, j, 0, 0)),
        compiler_params=pltpu.CompilerParams(
            dimension_semantics=("parallel", "parallel"),
            vmem_limit_bytes=32 * 1024 * 1024),
    )(a2c, b2c, inv_std, mask3, mask3, gamma, beta, w_rel, b_rel)
    return out


def re_unit_reference(h1, h2, mask, p):
    """Pure-JAX reference mirroring the PyTorch forward (eval mode)."""
    L, B, H = h2.shape
    hg = jnp.tanh(jnp.concatenate([h1, h2], axis=-1) @ p["w_r"] + p["b_r"])
    g = hg.max(axis=0)
    r1 = jnp.broadcast_to(h2[:, None], (L, L, B, H))
    r2 = jnp.broadcast_to(h2[None, :], (L, L, B, H))
    gb = jnp.broadcast_to(g[None, None], (L, L, B, H))
    re = jnp.concatenate([r1, r2, gb], axis=-1) @ p["w_h"] + p["b_h"]
    mean = re.mean(-1, keepdims=True)
    var = ((re - mean) ** 2).mean(-1, keepdims=True)
    re = (re - mean) / jnp.sqrt(var + 1e-5) * p["gamma"] + p["beta"]
    re = jnp.where(re > 0, re, jnp.expm1(re))
    re = jax.nn.sigmoid(re @ p["w_rel"] + p["b_rel"])
    mpair = mask[:, None, :, None] * mask[None, :, :, None]
    return re * mpair


if __name__ == "__main__":
    # Small synthetic shapes: seq length L=8, batch B=2, hidden H=32, relations R=6.
    L, B, H, R = 8, 2, 32, 6
    key = jax.random.PRNGKey(0)
    ks = jax.random.split(key, 10)

    h_re1 = jax.random.normal(ks[0], (L, B, H), jnp.float32)
    h_re2 = jax.random.normal(ks[1], (L, B, H), jnp.float32)
    lens = jnp.array([6, 4], jnp.int32)
    mask = (jnp.arange(L)[:, None] < lens[None, :]).astype(jnp.float32)   # (L, B)

    # Deterministic synthetic parameters (nn.Linear / nn.LayerNorm shapes).
    # Linear weights stored as (in_features, out_features) so x @ W matches torch.
    params = dict(
        w_r=0.1 * jax.random.normal(ks[2], (2 * H, H), jnp.float32),
        b_r=0.1 * jax.random.normal(ks[3], (H,), jnp.float32),
        w_h=0.1 * jax.random.normal(ks[4], (3 * H, H), jnp.float32),
        b_h=0.1 * jax.random.normal(ks[5], (H,), jnp.float32),
        gamma=1.0 + 0.1 * jax.random.normal(ks[6], (H,), jnp.float32),
        beta=0.1 * jax.random.normal(ks[7], (H,), jnp.float32),
        w_rel=0.1 * jax.random.normal(ks[8], (H, R), jnp.float32),
        b_rel=0.1 * jax.random.normal(ks[9], (R,), jnp.float32),
    )

    out = jax.block_until_ready(re_unit_forward(h_re1, h_re2, mask, params))
    ref = jax.block_until_ready(re_unit_reference(h_re1, h_re2, mask, params))
    np.testing.assert_allclose(np.asarray(out), np.asarray(ref), rtol=2e-3, atol=2e-3)
    print("KERNEL_OK")
</pallas_src>

<mosaic_0001>
module attributes {stable_mosaic.version = 11 : i64} {
  func.func @_global_pool_kernel(%arg0: memref<16x64xf32, #tpu.memory_space<vmem>>, %arg1: memref<16x32xf32, #tpu.memory_space<vmem>>, %arg2: memref<64x32xf32, #tpu.memory_space<vmem>>, %arg3: memref<1x32xf32, #tpu.memory_space<vmem>>, %arg4: memref<32x32xf32, #tpu.memory_space<vmem>>, %arg5: memref<32x32xf32, #tpu.memory_space<vmem>>, %arg6: memref<32x32xf32, #tpu.memory_space<vmem>>, %arg7: memref<1x32xf32, #tpu.memory_space<vmem>>, %arg8: memref<8x2x32xf32, #tpu.memory_space<vmem>>, %arg9: memref<8x2x32xf32, #tpu.memory_space<vmem>>, %arg10: memref<8x2x1xf32, #tpu.memory_space<vmem>>, %arg11: memref<8x2x1xf32, #tpu.memory_space<vmem>>) attributes {dimension_semantics = [], scalar_prefetch = 0 : i64, scratch_operands = 0 : i64, tpu.core_type = #tpu.core_type<tc>} {
    %c0 = arith.constant 0 : index
    %c0_0 = arith.constant 0 : index
    %0 = vector.load %arg0[%c0, %c0_0] : memref<16x64xf32, #tpu.memory_space<vmem>>, vector<16x64xf32>
    %c0_1 = arith.constant 0 : index
    %c0_2 = arith.constant 0 : index
    %1 = vector.load %arg2[%c0_1, %c0_2] : memref<64x32xf32, #tpu.memory_space<vmem>>, vector<64x32xf32>
    %cst = arith.constant dense<0.000000e+00> : vector<16x32xf32>
    %2 = tpu.matmul %0, %1, %cst {dimension_numbers = #tpu.dot_dimension_numbers<[1], [0], [0], [1], [0, 0, 1, 1], [], []>} : vector<16x64xf32>, vector<64x32xf32>, vector<16x32xf32> -> vector<16x32xf32>
    %c0_3 = arith.constant 0 : index
    %c0_4 = arith.constant 0 : index
    %3 = vector.load %arg3[%c0_3, %c0_4] : memref<1x32xf32, #tpu.memory_space<vmem>>, vector<1x32xf32>
    %4 = vector.broadcast %3 : vector<1x32xf32> to vector<16x32xf32>
    %5 = arith.addf %2, %4 : vector<16x32xf32>
    %6 = math.tanh %5 : vector<16x32xf32>
    %7 = vector.shape_cast %6 : vector<16x32xf32> to vector<8x2x32xf32>
    %cst_5 = arith.constant dense<0xFF800000> : vector<2x32xf32>
    %8 = vector.multi_reduction <maximumf>, %7, %cst_5 [0] : vector<8x2x32xf32> to vector<2x32xf32>
    %c0_6 = arith.constant 0 : index
    %c0_7 = arith.constant 0 : index
    %9 = vector.load %arg6[%c0_6, %c0_7] : memref<32x32xf32, #tpu.memory_space<vmem>>, vector<32x32xf32>
    %cst_8 = arith.constant dense<0.000000e+00> : vector<2x32xf32>
    %10 = tpu.matmul %8, %9, %cst_8 {dimension_numbers = #tpu.dot_dimension_numbers<[1], [0], [0], [1], [0, 0, 1, 1], [], []>} : vector<2x32xf32>, vector<32x32xf32>, vector<2x32xf32> -> vector<2x32xf32>
    %c0_9 = arith.constant 0 : index
    %c0_10 = arith.constant 0 : index
    %11 = vector.load %arg7[%c0_9, %c0_10] : memref<1x32xf32, #tpu.memory_space<vmem>>, vector<1x32xf32>
    %12 = vector.broadcast %11 : vector<1x32xf32> to vector<2x32xf32>
    %13 = arith.addf %10, %12 : vector<2x32xf32>
    %c0_11 = arith.constant 0 : index
    %c0_12 = arith.constant 0 : index
    %14 = vector.load %arg1[%c0_11, %c0_12] : memref<16x32xf32, #tpu.memory_space<vmem>>, vector<16x32xf32>
    %c0_13 = arith.constant 0 : index
    %c0_14 = arith.constant 0 : index
    %15 = vector.load %arg4[%c0_13, %c0_14] : memref<32x32xf32, #tpu.memory_space<vmem>>, vector<32x32xf32>
    %cst_15 = arith.constant dense<0.000000e+00> : vector<16x32xf32>
    %16 = tpu.matmul %14, %15, %cst_15 {dimension_numbers = #tpu.dot_dimension_numbers<[1], [0], [0], [1], [0, 0, 1, 1], [], []>} : vector<16x32xf32>, vector<32x32xf32>, vector<16x32xf32> -> vector<16x32xf32>
    %17 = vector.shape_cast %16 : vector<16x32xf32> to vector<8x2x32xf32>
    %18 = vector.shape_cast %13 : vector<2x32xf32> to vector<1x2x32xf32>
    %19 = vector.broadcast %18 : vector<1x2x32xf32> to vector<8x2x32xf32>
    %20 = arith.addf %17, %19 : vector<8x2x32xf32>
    %c0_16 = arith.constant 0 : index
    %c0_17 = arith.constant 0 : index
    %21 = vector.load %arg1[%c0_16, %c0_17] : memref<16x32xf32, #tpu.memory_space<vmem>>, vector<16x32xf32>
    %c0_18 = arith.constant 0 : index
    %c0_19 = arith.constant 0 : index
    %22 = vector.load %arg5[%c0_18, %c0_19] : memref<32x32xf32, #tpu.memory_space<vmem>>, vector<32x32xf32>
    %cst_20 = arith.constant dense<0.000000e+00> : vector<16x32xf32>
    %23 = tpu.matmul %21, %22, %cst_20 {dimension_numbers = #tpu.dot_dimension_numbers<[1], [0], [0], [1], [0, 0, 1, 1], [], []>} : vector<16x32xf32>, vector<32x32xf32>, vector<16x32xf32> -> vector<16x32xf32>
    %24 = vector.shape_cast %23 : vector<16x32xf32> to vector<8x2x32xf32>
    %cst_21 = arith.constant dense<0.000000e+00> : vector<8x2xf32>
    %25 = vector.multi_reduction <add>, %20, %cst_21 [2] : vector<8x2x32xf32> to vector<8x2xf32>
    %26 = vector.shape_cast %25 : vector<8x2xf32> to vector<8x2x1xf32>
    %cst_22 = arith.constant 3.200000e+01 : f32
    %27 = vector.broadcast %cst_22 : f32 to vector<8x2x1xf32>
    %28 = arith.divf %26, %27 : vector<8x2x1xf32>
    %29 = vector.broadcast %28 : vector<8x2x1xf32> to vector<8x2x32xf32>
    %30 = arith.subf %20, %29 : vector<8x2x32xf32>
    %cst_23 = arith.constant dense<0.000000e+00> : vector<8x2xf32>
    %31 = vector.multi_reduction <add>, %24, %cst_23 [2] : vector<8x2x32xf32> to vector<8x2xf32>
    %32 = vector.shape_cast %31 : vector<8x2xf32> to vector<8x2x1xf32>
    %cst_24 = arith.constant 3.200000e+01 : f32
    %33 = vector.broadcast %cst_24 : f32 to vector<8x2x1xf32>
    %34 = arith.divf %32, %33 : vector<8x2x1xf32>
    %35 = vector.broadcast %34 : vector<8x2x1xf32> to vector<8x2x32xf32>
    %36 = arith.subf %24, %35 : vector<8x2x32xf32>
    %c0_25 = arith.constant 0 : index
    %c0_26 = arith.constant 0 : index
    %c0_27 = arith.constant 0 : index
    %37 = vector.load %arg8[%c0_25, %c0_26, %c0_27] : memref<8x2x32xf32, #tpu.memory_space<vmem>>, vector<8x2x32xf32>
    tpu.vector_store %arg8[%c0_25, %c0_26, %c0_27], %30 {strides = array<i32>} : memref<8x2x32xf32, #tpu.memory_space<vmem>>, vector<8x2x32xf32>,
    %c0_28 = arith.constant 0 : index
    %c0_29 = arith.constant 0 : index
    %c0_30 = arith.constant 0 : index
    %38 = vector.load %arg9[%c0_28, %c0_29, %c0_30] : memref<8x2x32xf32, #tpu.memory_space<vmem>>, vector<8x2x32xf32>
    tpu.vector_store %arg9[%c0_28, %c0_29, %c0_30], %36 {strides = array<i32>} : memref<8x2x32xf32, #tpu.memory_space<vmem>>, vector<8x2x32xf32>,
    %39 = arith.mulf %30, %30 : vector<8x2x32xf32>
    %cst_31 = arith.constant dense<0.000000e+00> : vector<8x2xf32>
    %40 = vector.multi_reduction <add>, %39, %cst_31 [2] : vector<8x2x32xf32> to vector<8x2xf32>
    %41 = vector.shape_cast %40 : vector<8x2xf32> to vector<8x2x1xf32>
    %cst_32 = arith.constant 3.200000e+01 : f32
    %42 = vector.broadcast %cst_32 : f32 to vector<8x2x1xf32>
    %43 = arith.divf %41, %42 : vector<8x2x1xf32>
    %c0_33 = arith.constant 0 : index
    %c0_34 = arith.constant 0 : index
    %c0_35 = arith.constant 0 : index
    %44 = vector.load %arg10[%c0_33, %c0_34, %c0_35] : memref<8x2x1xf32, #tpu.memory_space<vmem>>, vector<8x2x1xf32>
    tpu.vector_store %arg10[%c0_33, %c0_34, %c0_35], %43 {strides = array<i32>} : memref<8x2x1xf32, #tpu.memory_space<vmem>>, vector<8x2x1xf32>,
    %45 = arith.mulf %36, %36 : vector<8x2x32xf32>
    %cst_36 = arith.constant dense<0.000000e+00> : vector<8x2xf32>
    %46 = vector.multi_reduction <add>, %45, %cst_36 [2] : vector<8x2x32xf32> to vector<8x2xf32>
    %47 = vector.shape_cast %46 : vector<8x2xf32> to vector<8x2x1xf32>
    %cst_37 = arith.constant 3.200000e+01 : f32
    %48 = vector.broadcast %cst_37 : f32 to vector<8x2x1xf32>
    %49 = arith.divf %47, %48 : vector<8x2x1xf32>
    %c0_38 = arith.constant 0 : index
    %c0_39 = arith.constant 0 : index
    %c0_40 = arith.constant 0 : index
    %50 = vector.load %arg11[%c0_38, %c0_39, %c0_40] : memref<8x2x1xf32, #tpu.memory_space<vmem>>, vector<8x2x1xf32>
    tpu.vector_store %arg11[%c0_38, %c0_39, %c0_40], %49 {strides = array<i32>} : memref<8x2x1xf32, #tpu.memory_space<vmem>>, vector<8x2x1xf32>,
    return
  }
}

</mosaic_0001>

<bundles_post_ra>
// kernel: tpu_custom_call.1
= control target key start
LH: loop header
LB: loop body
LE: loop exit
PB: predicated region body
PF: predicated region fallthrough
CT: control target
= control target key end

     0   :  { %17 = vsyncpa [#allocation3], 0  ;;  %s1371_s0 = inlined_call_operand.hbm [shape: f32[16,64], index: 0, kind: input, shape index: {}]   ;;  %s1372_s1 = inlined_call_operand.hbm [shape: f32[16,32], index: 1, kind: input, shape index: {}]   ;;  %s1373_s2 = inlined_call_operand.vmem [shape: f32[64,32], index: 2, kind: input, shape index: {}]   ;;  %s1374_s3 = inlined_call_operand.vmem [shape: f32[1,32], index: 3, kind: input, shape index: {}]   ;;  %s1375_s4 = inlined_call_operand.vmem [shape: f32[32,32], index: 4, kind: input, shape index: {}]   ;;  %s1376_s5 = inlined_call_operand.vmem [shape: f32[32,32], index: 5, kind: input, shape index: {}]   ;;  %s1377_s6 = inlined_call_operand.vmem [shape: f32[32,32], index: 6, kind: input, shape index: {}]   ;;  %s1378_s7 = inlined_call_operand.vmem [shape: f32[1,32], index: 7, kind: input, shape index: {}]   ;;  %s1379_s8 = inlined_call_operand.hbm [shape: f32[8,2,32], index: 8, kind: output, shape index: {0}]   ;;  %s1380_s9 = inlined_call_operand.hbm [shape: f32[8,2,32], index: 9, kind: output, shape index: {1}]   ;;  %s1381_s10 = inlined_call_operand.vmem [shape: f32[8,2,1], index: 10, kind: output, shape index: {2}]   ;;  %s1382_s11 = inlined_call_operand.vmem [shape: f32[8,2,1], index: 11, kind: output, shape index: {3}]  }
   0x1   :  { %18 = vsyncpa [#allocation6], 0 }
   0x2   :  { %19 = vsyncpa [#allocation4], 0 }
   0x3   :  { %20 = vsyncpa [#allocation9], 0  ;;  %s998_s17 = smov [#allocation2]  }
   0x4   :  { %s26_s18 = sshll.u32 %s998_s17, 4  ;;  %s27_s18 = int_to_ptr.vmem [resolvable:$true] %s26_s18 }
   0x5   :  { %s918_s19 = scalar_lea.vmem %s27_s18, 256  ;;  %p923_p1 = scmp.lt.s32.totalorder %s27_s18, %s27_s18 }
   0x6   :  { %p919_p0 = scmp.ne.s32.totalorder %s27_s18, %s918_s19  ;;  %p924_p2 = scmp.lt.s32.totalorder %s918_s19, %s918_s19 }
   0x8   :  { %p925_p3 = por %p924_p2, %p923_p1 }
   0xa   :  { %p926_p4 = pnand %p925_p3, %p919_p0 }
   0xc   :  { %929 = shalt.err (!%p926_p4)
}
   0xd   :  { %s999_s20 = smov 128   ;;  %s1000_s21 = smov 8  }
   0xe   :  { %32 = dma.hbm_to_vmem [thread:$0]  %s1371_s0, 256, %s27_s18, [#allocation3], %s999_s20, %s999_s20, %s1000_s21  }
   0xf   :  { %s1001_s24 = smov [#allocation5]  }
  0x10   :  { %s38_s25 = sshll.u32 %s1001_s24, 4  ;;  %s39_s25 = int_to_ptr.vmem [resolvable:$true] %s38_s25 }
  0x11   :  { %s938_s26 = scalar_lea.vmem %s39_s25, 256  ;;  %p943_p6 = scmp.lt.s32.totalorder %s39_s25, %s39_s25 }
  0x12   :  { %p939_p5 = scmp.ne.s32.totalorder %s39_s25, %s938_s26  ;;  %p944_p7 = scmp.lt.s32.totalorder %s938_s26, %s938_s26 }
  0x14   :  { %p945_p8 = por %p944_p7, %p943_p6 }
  0x16   :  { %p946_p9 = pnand %p945_p8, %p939_p5 }
  0x18   :  { %949 = shalt.err (!%p946_p9)
}
  0x19   :  { %44 = dma.hbm_to_vmem [thread:$0]  %s1372_s1, 256, %s39_s25, [#allocation6], %s999_s20, %s999_s20, %s1000_s21  }
  0x1a   :  { %990 = dma.done.wait [#allocation3], 256  }
  0x1b   :  { %991 = vsyncadd [#allocation3], 4294967040 }
  0x1c   :  { %992 = dma.done.wait [#allocation6], 256  }
  0x1d   :  { %993 = vsyncadd [#allocation6], 4294967040  ;;  %v72_v0 = vld [vmem:[%s1373_s2 + $0x38] sm:$0xff]  ;;  %v71_v1 = vld [vmem:[%s1373_s2 + $0x30] sm:$0xff]  ;;  %vm80_vm0 = vcmask 523264   ;;  %vm235_vm1 = vcmask 261120   ;;  %v170_v25 = vlaneseq }
  0x1e   :  { %843 = vmatprep.subr.mxu0 %v72_v0  ;;  %v70_v2 = vld [vmem:[%s1373_s2 + $0x28] sm:$0xff]  ;;  %v63_v3 = vld [vmem:[#allocation2] sm:$0xff]  ;;  %v68_v5 = vld [vmem:[%s1373_s2 + $0x18] sm:$0xff]  ;;  %v1002_v17 = vmov 0.0   ;;  %vm1003_vm2 = vmmov 0   ;;  %vm208_vm3 = vcmask 254976  }
  0x1f   :  { %844 = vmatpush3.msra.mxu0 %v72_v0  ;;  %859 = vmatprep.mubr.msk.f32.mxu0 %vm80_vm0, %v63_v3  ;;  %v69_v4 = vld [vmem:[%s1373_s2 + $0x20] sm:$0xff]  ;;  %v67_v6 = vld [vmem:[%s1373_s2 + $0x10] sm:$0xff]  ;;  %v66_v7 = vld [vmem:[%s1373_s2 + $0x8] sm:$0xff]  ;;  %v1004_v23 = vmov 1983009808   ;;  %v171_v31 = vshrl.u32 %v170_v25, 7 }
  0x20   :  { %845 = vmatprep.subr.mxu0 %v71_v1  ;;  %v65_v8 = vld [vmem:[%s1373_s2] sm:$0xff]  ;;  %v64_v9 = vld [vmem:[#allocation2 + $0x8] sm:$0xff]  ;;  %v451_v10 = vld [vmem:[%s1376_s5 + $0x18] sm:$0xff]  ;;  %862 = vmatprep.subr.mxu1 %v1002_v17  ;;  %v168_v24 = vunpack.c.l.s4 %v1004_v23  ;;  %vm708_vm4 = vcmask 1024   ;;  %s1005_s1 = smov [#allocation7]   ;;  %s1006_s16 = smov [#allocation8]  }
  0x21   :  { %846 = vmatpush3.msra.mxu0 %v71_v1  ;;  %v1103_v11 = vld [vmem:[#allocation5] sm:$0xff]  ;;  %v449_v13 = vld [vmem:[%s1376_s5 + $0x8] sm:$0xff]  ;;  %v448_v14 = vld [vmem:[%s1376_s5] sm:$0xff]  ;;  %870 = vmatprep.mubr.msk.f32.mxu1 %vm1003_vm2, %v1002_v17  ;;  %s770_s15 = sshll.u32 %s1005_s1, 4  ;;  %s782_s17 = sshll.u32 %s1006_s16, 4  ;;  %s771_s15 = int_to_ptr.vmem [resolvable:$true] %s770_s15  ;;  %s783_s17 = int_to_ptr.vmem [resolvable:$true] %s782_s17 }
  0x22   :  { %847 = vmatprep.subr.mxu0 %v70_v2  ;;  %v450_v12 = vld [vmem:[%s1376_s5 + $0x10] sm:$0xff]  ;;  %v1117_v15 = vld [vmem:[#allocation5 + $0x8] sm:$0xff]  ;;  %v225_v19 = vld [vmem:[%s1377_s6 + $0x8] sm:$0xff]  ;;  %v169_v30 = vunpack.c.0.s8 %v168_v24  ;;  %s950_s18 = scalar_lea.vmem %s771_s15, 256  ;;  %p955_p11 = scmp.lt.s32.totalorder %s771_s15, %s771_s15 }
  0x23   :  { %848 = vmatpush3.msra.mxu0 %v70_v2  ;;  %v227_v16 = vld [vmem:[%s1377_s6 + $0x18] sm:$0xff]  ;;  %v226_v18 = vld [vmem:[%s1377_s6 + $0x10] sm:$0xff]  ;;  %v224_v20 = vld [vmem:[%s1377_s6] sm:$0xff]  ;;  %p951_p10 = scmp.ne.s32.totalorder %s771_s15, %s950_s18  ;;  %p956_p12 = scmp.lt.s32.totalorder %s950_s18, %s950_s18 }
  0x24   :  { %849 = vmatprep.subr.mxu0 %v69_v4  ;;  %863 = vmatpush3.msra.mxu1 %v227_v16  ;;  %v1136_v21 = vld [vmem:[%s1375_s4 + $0x18] sm:$0xff]  ;;  %v807_v22 = vld [vmem:[%s1374_s3] ss:$0 sm:$0xff]  ;;  %v1142_v32 = vsub.s32 %v169_v30, %v171_v31 }
  0x25   :  { %850 = vmatpush3.msra.mxu0 %v69_v4  ;;  %864 = vmatprep.subr.mxu1 %v1002_v17  ;;  %p957_p13 = por %p956_p12, %p955_p11 }
  0x26   :  { %851 = vmatprep.subr.mxu0 %v68_v5  ;;  %865 = vmatpush3.msra.mxu1 %v226_v18 }
  0x27   :  { %852 = vmatpush3.msra.mxu0 %v68_v5  ;;  %866 = vmatprep.subr.mxu1 %v1002_v17  ;;  %p958_p0 = pnand %p957_p13, %p951_p10 }
  0x28   :  { %853 = vmatprep.subr.mxu0 %v67_v6  ;;  %867 = vmatpush3.msra.mxu1 %v225_v19 }
  0x29   :  { %854 = vmatpush3.msra.mxu0 %v67_v6  ;;  %868 = vmatprep.subr.mxu1 %v1002_v17 }
  0x2a   :  { %855 = vmatprep.subr.mxu0 %v66_v7  ;;  %869 = vmatpush3.msra.mxu1 %v224_v20 }
  0x2b   :  { %856 = vmatpush3.msra.mxu0 %v66_v7  ;;  %873 = vmatprep.subr.mxu1 %v1136_v21 }
  0x2c   :  { %857 = vmatprep.subr.mxu0 %v65_v8 }
  0x2d   :  { %858 = vmatpush3.msra.mxu0 %v65_v8 }
  0x2e   :  { %860 = vmatmul.mubr.msk.f32.vlgmr.msra.gmra.mxu0 %vm80_vm0, %v64_v9  ;;  %884 = vmatprep.subr.mxu0 %v451_v10 }
  0x2f   :  { %885 = vmatpush3.msra.mxu0 %v451_v10  ;;  %892 = vmatprep.mubr.msk.f32.mxu0 %vm235_vm1, %v1103_v11 }
  0x30   :  { %886 = vmatprep.subr.mxu0 %v450_v12 }
  0x31   :  { %887 = vmatpush3.msra.mxu0 %v450_v12  ;;  %v313_v12 = vld [vmem:[%s1375_s4 + $0x10] sm:$0xff] }
  0x32   :  { %888 = vmatprep.subr.mxu0 %v449_v13 }
  0x33   :  { %889 = vmatpush3.msra.mxu0 %v449_v13  ;;  %v312_v13 = vld [vmem:[%s1375_s4 + $0x8] sm:$0xff] }
  0x34   :  { %890 = vmatprep.subr.mxu0 %v448_v14 }
  0x35   :  { %891 = vmatpush3.msra.mxu0 %v448_v14  ;;  %v311_v14 = vld [vmem:[%s1375_s4] sm:$0xff] }
  0x36   :  { %893 = vmatmul.mubr.msk.f32.vlgmr.msra.gmra.mxu0 %vm235_vm1, %v1117_v15 }
  0xee   :  { %v861_v26 = vpop.f32.mrf.mxu0 }
  0xef   :  { %v159_v27 = vadd.f32 %v861_v26, %v807_v22 }
  0xf0   :  { %v153_v28 = vpop.f32.mrf.mxu0 }
  0xf1   :  { %906 = vtanh.f32 %v159_v27  ;;  %v154_v29 = vadd.f32 %v807_v22, %v153_v28 }
  0xf3   :  { %908 = vtanh.f32 %v154_v29 }
  0xf6   :  { %v1144_v33 = vpop.f32.mrf.mxu0 }
  0xf7   :  { %v1148_v34 = vrot.slane %v1144_v33, %v1142_v32 }
  0xf8   :  { %v518_v35 = vpop.f32.mrf.mxu0 }
  0xf9   :  { %v624_v36 = vsel %vm208_vm3, %v1148_v34, 0.0  ;;  %v529_v37 = vcombine.high %v518_v35, %v518_v35  ;;  %v1153_v38 = vrot.slane %v518_v35, %v1142_v32  ;;  %v561_v39 = vcombine.high %v1148_v34, %v1148_v34 }
  0xfa   :  { %625 = vadd.xlane.f32.xlu0 %v624_v36  ;;  %v810_v36 = vld [vmem:[%s1378_s7] ss:$0 sm:$0xff] }
  0xfb   :  { %v1158_v40 = vrot.slane %v529_v37, %v1142_v32  ;;  %v612_v41 = vsel %vm208_vm3, %v1153_v38, 0.0  ;;  %v1164_v42 = vcombine.high %v1153_v38, %v1153_v38  ;;  %v627_v43 = vsel %vm208_vm3, %v561_v39, 0.0 }
  0xfc   :  { %628 = vadd.xlane.f32.xlu1 %v627_v43 }
  0xfd   :  { %v615_v45 = vsel %vm208_vm3, %v1164_v42, 0.0  ;;  %v1171_v46 = vcombine.high %v1158_v40, %v1158_v40  ;;  %v618_v49 = vsel %vm208_vm3, %v1158_v40, 0.0 }
  0xfe   :  { %v907_v44 = vpop.eup %906  ;;  %613 = vadd.xlane.f32.xlu0 %v612_v41 }
  0xff   :  { %v183_v47 = vcombine.high %v907_v44, %v907_v44  ;;  %v190_v48 = vrot.slane %v907_v44, %v1142_v32  ;;  %v621_v55 = vsel %vm208_vm3, %v1171_v46, 0.0 }
 0x100   :  { %v909_v50 = vpop.eup %908  ;;  %616 = vadd.xlane.f32.xlu1 %v615_v45 }
 0x101   :  { %v166_v51 = vcombine.high %v909_v50, %v909_v50  ;;  %v173_v52 = vrot.slane %v909_v50, %v1142_v32  ;;  %v197_v53 = vrot.slane %v183_v47, %v1142_v32  ;;  %v198_v54 = vcombine.high %v190_v48, %v190_v48 }
 0x102   :  { %619 = vadd.xlane.f32.xlu0 %v618_v49  ;;  %v213_v2 = vsel %vm208_vm3, %v190_v48, -inf }
 0x103   :  { %v180_v56 = vrot.slane %v166_v51, %v1142_v32  ;;  %v181_v57 = vcombine.high %v173_v52, %v173_v52  ;;  %v199_v58 = vcombine.high %v197_v53, %v197_v53  ;;  %v209_v59 = vsel %vm208_vm3, %v173_v52, -inf }
 0x104   :  { %v215_v63 = vsel %vm208_vm3, %v198_v54, -inf  ;;  %622 = vadd.xlane.f32.xlu1 %v621_v55  ;;  %v217_v3 = vsel %vm208_vm3, %v197_v53, -inf  ;;  %v214_v5 = vmax.f32 %v209_v59, %v213_v2 }
 0x105   :  { %v182_v60 = vcombine.high %v180_v56, %v180_v56  ;;  %v210_v61 = vsel %vm208_vm3, %v181_v57, -inf  ;;  %v211_v62 = vsel %vm208_vm3, %v180_v56, -inf  ;;  %v219_v4 = vsel %vm208_vm3, %v199_v58, -inf }
 0x106   :  { %v216_v0 = vmax.f32 %v210_v61, %v215_v63  ;;  %v218_v6 = vmax.f32 %v211_v62, %v217_v3  ;;  %v546_v57 = vcombine.high %v1144_v33, %v1144_v33 }
 0x107   :  { %v212_v1 = vsel %vm208_vm3, %v182_v60, -inf }
 0x108   :  { %v220_v7 = vmax.f32 %v212_v1, %v219_v4  ;;  %v221_v8 = vmax.f32 %v214_v5, %v216_v0  ;;  %v1246_v63 = vrot.slane %v546_v57, %v1142_v32 }
 0x10a   :  { %v222_v9 = vmax.f32 %v218_v6, %v220_v7  ;;  %v1258_v3 = vcombine.high %v1246_v63, %v1246_v63 }
 0x10c   :  { %v223_v10 = vmax.f32 %v221_v8, %v222_v9  ;;  %v633_v5 = vsel %vm208_vm3, %v1258_v3, 0.0 }
 0x10e   :  { %871 = vmatmul.mubr.msk.f32.vlgmr.msra.gmra.mxu1 %vm235_vm1, %v223_v10 }
 0x10f   :  { %874 = vmatpush3.msra.mxu1 %v1136_v21  ;;  %881 = vmatprep.mubr.msk.f32.mxu1 %vm235_vm1, %v1103_v11 }
 0x110   :  { %875 = vmatprep.subr.mxu1 %v313_v12 }
 0x111   :  { %876 = vmatpush3.msra.mxu1 %v313_v12 }
 0x112   :  { %877 = vmatprep.subr.mxu1 %v312_v13 }
 0x113   :  { %878 = vmatpush3.msra.mxu1 %v312_v13 }
 0x114   :  { %879 = vmatprep.subr.mxu1 %v311_v14 }
 0x115   :  { %880 = vmatpush3.msra.mxu1 %v311_v14 }
 0x116   :  { %882 = vmatmul.mubr.msk.f32.vlgmr.msra.gmra.mxu1 %vm235_vm1, %v1117_v15 }
 0x183   :  { %v626_v16 = vpop.xlane.xlu0 %625 }
 0x184   :  { %v640_v17 = vmul.f32 0.03125, %v626_v16 }
 0x185   :  { %v629_v19 = vpop.xlane.xlu1 %628 }
 0x186   :  { %v1205_v18 = vsub.f32 %v1148_v34, %v640_v17  ;;  %v641_v11 = vmul.f32 0.03125, %v629_v19 }
 0x187   :  { %v614_v20 = vpop.xlane.xlu0 %613 }
 0x188   :  { %664 = vst.msk [vmem:[#allocation8 + $0x8] sm:$0x3] %vm208_vm3, %v1205_v18  ;;  %v636_v21 = vmul.f32 0.03125, %v614_v20  ;;  %v1209_v22 = vsub.f32 %v561_v39, %v641_v11  ;;  %v721_v13 = vmul.f32 %v1205_v18, %v1205_v18 }
 0x189   :  { %v617_v24 = vpop.xlane.xlu1 %616 }
 0x18a   :  { %v644_v23 = vsub.f32 %v1153_v38, %v636_v21  ;;  %665 = vst.msk [vmem:[#allocation8 + $0xa] sm:$0x3] %vm208_vm3, %v1209_v22  ;;  %v637_v15 = vmul.f32 0.03125, %v617_v24  ;;  %v722_v16 = vmul.f32 %v1209_v22, %v1209_v22  ;;  %v737_v17 = vsel %vm208_vm3, %v721_v13, 0.0 }
 0x18b   :  { %v620_v25 = vpop.xlane.xlu0 %619 }
 0x18c   :  { %660 = vst.msk [vmem:[#allocation8] sm:$0x3] %vm208_vm3, %v644_v23  ;;  %v638_v26 = vmul.f32 0.03125, %v620_v25  ;;  %v645_v27 = vsub.f32 %v1164_v42, %v637_v15  ;;  %v717_v4 = vmul.f32 %v644_v23, %v644_v23  ;;  %v740_v19 = vsel %vm208_vm3, %v722_v16, 0.0 }
 0x18d   :  { %v623_v29 = vpop.xlane.xlu1 %622 }
 0x18e   :  { %v646_v28 = vsub.f32 %v1158_v40, %v638_v26  ;;  %661 = vst.msk [vmem:[#allocation8 + $0x2] sm:$0x3] %vm208_vm3, %v645_v27  ;;  %v639_v30 = vmul.f32 0.03125, %v623_v29  ;;  %v718_v6 = vmul.f32 %v645_v27, %v645_v27  ;;  %v725_v7 = vsel %vm208_vm3, %v717_v4, 0.0 }
 0x190   :  { %662 = vst.msk [vmem:[#allocation8 + $0x4] sm:$0x3] %vm208_vm3, %v646_v28  ;;  %v647_v31 = vsub.f32 %v1171_v46, %v639_v30  ;;  %v719_v8 = vmul.f32 %v646_v28, %v646_v28  ;;  %v728_v9 = vsel %vm208_vm3, %v718_v6, 0.0 }
 0x192   :  { %663 = vst.msk [vmem:[#allocation8 + $0x6] sm:$0x3] %vm208_vm3, %v647_v31  ;;  %v720_v10 = vmul.f32 %v647_v31, %v647_v31  ;;  %v731_v12 = vsel %vm208_vm3, %v719_v8, 0.0 }
 0x194   :  { %v734_v14 = vsel %vm208_vm3, %v720_v10, 0.0 }
 0x1ce   :  { %v305_v34 = vpop.f32.mrf.mxu1 }
 0x1cf   :  { %v306_v40 = vadd.f32 %v810_v36, %v305_v34 }
 0x1d0   :  { %v872_v35 = vpop.f32.mrf.mxu1 }
 0x1d6   :  { %v883_v37 = vpop.f32.mrf.mxu1 }
 0x1d7   :  { %v415_v38 = vcombine.high %v883_v37, %v883_v37  ;;  %v422_v39 = vrot.slane %v883_v37, %v1142_v32 }
 0x1d8   :  { %v387_v41 = vpop.f32.mrf.mxu1 }
 0x1d9   :  { %v429_v42 = vrot.slane %v415_v38, %v1142_v32  ;;  %v430_v43 = vcombine.high %v422_v39, %v422_v39  ;;  %v398_v44 = vcombine.high %v387_v41, %v387_v41  ;;  %v405_v45 = vrot.slane %v387_v41, %v1142_v32 }
 0x1da   :  { %v444_v46 = vadd.f32 %v422_v39, %v306_v40 }
 0x1db   :  { %v412_v47 = vrot.slane %v398_v44, %v1142_v32  ;;  %v445_v48 = vadd.f32 %v430_v43, %v306_v40  ;;  %v1229_v50 = vadd.f32 %v405_v45, %v306_v40  ;;  %v431_v53 = vcombine.high %v429_v42, %v429_v42 }
 0x1dc   :  { %v583_v49 = vsel %vm208_vm3, %v444_v46, 0.0  ;;  %v413_v54 = vcombine.high %v405_v45, %v405_v45  ;;  %v1234_v56 = vadd.f32 %v429_v42, %v306_v40  ;;  %v630_v32 = vsel %vm208_vm3, %v1246_v63, 0.0 }
 0x1dd   :  { %584 = vadd.xlane.f32.xlu0 %v583_v49  ;;  %v586_v51 = vsel %vm208_vm3, %v445_v48, 0.0  ;;  %v442_v52 = vadd.f32 %v412_v47, %v306_v40  ;;  %v571_v55 = vsel %vm208_vm3, %v1229_v50, 0.0  ;;  %v1239_v59 = vadd.f32 %v431_v53, %v306_v40 }
 0x1de   :  { %587 = vadd.xlane.f32.xlu1 %v586_v51  ;;  %v414_v60 = vcombine.high %v412_v47, %v412_v47  ;;  %v589_v61 = vsel %vm208_vm3, %v1234_v56, 0.0  ;;  %v1243_v62 = vadd.f32 %v413_v54, %v306_v40 }
 0x1df   :  { %v577_v58 = vsel %vm208_vm3, %v442_v52, 0.0  ;;  %v592_v0 = vsel %vm208_vm3, %v1239_v59, 0.0 }
 0x1e0   :  { %v1250_v33 = vadd.f32 %v414_v60, %v306_v40  ;;  %v574_v1 = vsel %vm208_vm3, %v1243_v62, 0.0 }
 0x1e1   :  { %572 = vadd.xlane.f32.xlu0 %v571_v55 }
 0x1e2   :  { %578 = vadd.xlane.f32.xlu1 %v577_v58  ;;  %v580_v2 = vsel %vm208_vm3, %v1250_v33, 0.0 }
 0x1e5   :  { %590 = vadd.xlane.f32.xlu0 %v589_v61 }
 0x1e6   :  { %593 = vadd.xlane.f32.xlu1 %v592_v0 }
 0x1e9   :  { %575 = vadd.xlane.f32.xlu0 %v574_v1 }
 0x1ea   :  { %581 = vadd.xlane.f32.xlu1 %v580_v2 }
 0x1ed   :  { %631 = vadd.xlane.f32.xlu0 %v630_v32 }
 0x1ee   :  { %634 = vadd.xlane.f32.xlu1 %v633_v5 }
 0x1f1   :  { %726 = vadd.xlane.f32.xlu0 %v725_v7 }
 0x1f2   :  { %729 = vadd.xlane.f32.xlu1 %v728_v9 }
 0x1f5   :  { %732 = vadd.xlane.f32.xlu0 %v731_v12 }
 0x1f6   :  { %735 = vadd.xlane.f32.xlu1 %v734_v14 }
 0x1f9   :  { %738 = vadd.xlane.f32.xlu0 %v737_v17 }
 0x1fa   :  { %741 = vadd.xlane.f32.xlu1 %v740_v19 }
 0x266   :  { %v585_v11 = vpop.xlane.xlu0 %584 }
 0x267   :  { %v600_v20 = vmul.f32 0.03125, %v585_v11  ;;  %v588_v21 = vpop.xlane.xlu1 %587 }
 0x268   :  { %v601_v23 = vmul.f32 0.03125, %v588_v21 }
 0x269   :  { %v608_v24 = vsub.f32 %v444_v46, %v600_v20 }
 0x26a   :  { %v609_v15 = vsub.f32 %v445_v48, %v601_v23  ;;  %v573_v18 = vpop.xlane.xlu0 %572 }
 0x26b   :  { %656 = vst.msk [vmem:[#allocation7 + $0x8] sm:$0x3] %vm208_vm3, %v608_v24  ;;  %v596_v25 = vmul.f32 0.03125, %v573_v18  ;;  %v579_v26 = vpop.xlane.xlu1 %578  ;;  %v672_v27 = vmul.f32 %v608_v24, %v608_v24 }
 0x26c   :  { %657 = vst.msk [vmem:[#allocation7 + $0xa] sm:$0x3] %vm208_vm3, %v609_v15  ;;  %v598_v22 = vmul.f32 0.03125, %v579_v26  ;;  %v673_v28 = vmul.f32 %v609_v15, %v609_v15 }
 0x26d   :  { %v604_v29 = vsub.f32 %v1229_v50, %v596_v25  ;;  %v688_v30 = vsel %vm208_vm3, %v672_v27, 0.0 }
 0x26e   :  { %v606_v31 = vsub.f32 %v442_v52, %v598_v22  ;;  %v591_v34 = vpop.xlane.xlu0 %590  ;;  %689 = vadd.xlane.f32.xlu0 %v688_v30  ;;  %v691_v35 = vsel %vm208_vm3, %v673_v28, 0.0 }
 0x26f   :  { %652 = vst.msk [vmem:[#allocation7] sm:$0x3] %vm208_vm3, %v604_v29  ;;  %v602_v36 = vmul.f32 0.03125, %v591_v34  ;;  %v594_v37 = vpop.xlane.xlu1 %593  ;;  %692 = vadd.xlane.f32.xlu1 %v691_v35  ;;  %v668_v38 = vmul.f32 %v604_v29, %v604_v29 }
 0x270   :  { %654 = vst.msk [vmem:[#allocation7 + $0x4] sm:$0x3] %vm208_vm3, %v606_v31  ;;  %v603_v39 = vmul.f32 0.03125, %v594_v37  ;;  %v670_v50 = vmul.f32 %v606_v31, %v606_v31 }
 0x271   :  { %v610_v40 = vsub.f32 %v1234_v56, %v602_v36  ;;  %v676_v41 = vsel %vm208_vm3, %v668_v38, 0.0 }
 0x272   :  { %v611_v42 = vsub.f32 %v1239_v59, %v603_v39  ;;  %677 = vadd.xlane.f32.xlu0 %v676_v41  ;;  %v576_v43 = vpop.xlane.xlu0 %575  ;;  %v682_v58 = vsel %vm208_vm3, %v670_v50, 0.0 }
 0x273   :  { %658 = vst.msk [vmem:[#allocation7 + $0xc] sm:$0x3] %vm208_vm3, %v610_v40  ;;  %v597_v44 = vmul.f32 0.03125, %v576_v43  ;;  %v582_v45 = vpop.xlane.xlu1 %581  ;;  %v674_v46 = vmul.f32 %v610_v40, %v610_v40 }
 0x274   :  { %659 = vst.msk [vmem:[#allocation7 + $0xe] sm:$0x3] %vm208_vm3, %v611_v42  ;;  %v599_v47 = vmul.f32 0.03125, %v582_v45  ;;  %v675_v60 = vmul.f32 %v611_v42, %v611_v42 }
 0x275   :  { %v605_v48 = vsub.f32 %v1243_v62, %v597_v44  ;;  %v694_v49 = vsel %vm208_vm3, %v674_v46, 0.0 }
 0x276   :  { %v607_v51 = vsub.f32 %v1250_v33, %v599_v47  ;;  %695 = vadd.xlane.f32.xlu0 %v694_v49  ;;  %v632_v52 = vpop.xlane.xlu0 %631 }
 0x277   :  { %653 = vst.msk [vmem:[#allocation7 + $0x2] sm:$0x3] %vm208_vm3, %v605_v48  ;;  %v642_v53 = vmul.f32 0.03125, %v632_v52  ;;  %v635_v54 = vpop.xlane.xlu1 %634  ;;  %v669_v55 = vmul.f32 %v605_v48, %v605_v48 }
 0x278   :  { %655 = vst.msk [vmem:[#allocation7 + $0x6] sm:$0x3] %vm208_vm3, %v607_v51  ;;  %v643_v56 = vmul.f32 0.03125, %v635_v54  ;;  %v671_v32 = vmul.f32 %v607_v51, %v607_v51 }
 0x279   :  { %v650_v57 = vsub.f32 %v1246_v63, %v642_v53  ;;  %v679_v59 = vsel %vm208_vm3, %v669_v55, 0.0 }
 0x27a   :  { %v651_v61 = vsub.f32 %v1258_v3, %v643_v56  ;;  %v727_v62 = vpop.xlane.xlu0 %726  ;;  %683 = vadd.xlane.f32.xlu0 %v682_v58  ;;  %680 = vadd.xlane.f32.xlu1 %v679_v59  ;;  %v697_v3 = vsel %vm208_vm3, %v675_v60, 0.0  ;;  %v685_v8 = vsel %vm208_vm3, %v671_v32, 0.0 }
 0x27b   :  { %666 = vst.msk [vmem:[#allocation8 + $0xc] sm:$0x3] %vm208_vm3, %v650_v57  ;;  %v749_v0 = vmul.f32 0.03125, %v727_v62  ;;  %v730_v33 = vpop.xlane.xlu1 %729  ;;  %v723_v1 = vmul.f32 %v650_v57, %v650_v57 }
 0x27c   :  { %667 = vst.msk [vmem:[#allocation8 + $0xe] sm:$0x3] %vm208_vm3, %v651_v61  ;;  %v750_v2 = vmul.f32 0.03125, %v730_v33  ;;  %v724_v9 = vmul.f32 %v651_v61, %v651_v61 }
 0x27d   :  { %757 = vst.msk [vmem:[%s1382_s11] sm:$0x3] %vm708_vm4, %v749_v0  ;;  %v743_v63 = vsel %vm208_vm3, %v723_v1, 0.0 }
 0x27e   :  { %758 = vst.msk [vmem:[%s1382_s11 + $0x2] sm:$0x3] %vm708_vm4, %v750_v2  ;;  %v733_v4 = vpop.xlane.xlu0 %732  ;;  %744 = vadd.xlane.f32.xlu0 %v743_v63  ;;  %698 = vadd.xlane.f32.xlu1 %v697_v3  ;;  %v746_v16 = vsel %vm208_vm3, %v724_v9, 0.0 }
 0x27f   :  { %v751_v5 = vmul.f32 0.03125, %v733_v4  ;;  %v736_v6 = vpop.xlane.xlu1 %735 }
 0x280   :  { %v752_v7 = vmul.f32 0.03125, %v736_v6 }
 0x281   :  { %759 = vst.msk [vmem:[%s1382_s11 + $0x4] sm:$0x3] %vm708_vm4, %v751_v5 }
 0x282   :  { %760 = vst.msk [vmem:[%s1382_s11 + $0x6] sm:$0x3] %vm708_vm4, %v752_v7  ;;  %v739_v10 = vpop.xlane.xlu0 %738  ;;  %686 = vadd.xlane.f32.xlu1 %v685_v8 }
 0x283   :  { %v753_v12 = vmul.f32 0.03125, %v739_v10  ;;  %v742_v13 = vpop.xlane.xlu1 %741 }
 0x284   :  { %v754_v14 = vmul.f32 0.03125, %v742_v13 }
 0x285   :  { %761 = vst.msk [vmem:[%s1382_s11 + $0x8] sm:$0x3] %vm708_vm4, %v753_v12 }
 0x286   :  { %762 = vst.msk [vmem:[%s1382_s11 + $0xa] sm:$0x3] %vm708_vm4, %v754_v14  ;;  %747 = vadd.xlane.f32.xlu1 %v746_v16 }
 0x287   :  { %961 = shalt.err (!%p958_p0)
}
 0x288   :  { %s1007_s19 = smov 32   ;;  %s1008_s20 = smov 2  }
 0x289   :  { %776 = dma.vmem_to_hbm [thread:$0]  %s771_s15, 256, %s1379_s8, [#allocation4], %s1007_s19, %s1007_s19, %s1008_s20  }
 0x28a   :  { %s970_s21 = scalar_lea.vmem %s783_s17, 256  ;;  %p975_p2 = scmp.lt.s32.totalorder %s783_s17, %s783_s17 }
 0x28b   :  { %p971_p1 = scmp.ne.s32.totalorder %s783_s17, %s970_s21  ;;  %p976_p3 = scmp.lt.s32.totalorder %s970_s21, %s970_s21 }
 0x28d   :  { %p977_p4 = por %p976_p3, %p975_p2 }
 0x28f   :  { %p978_p5 = pnand %p977_p4, %p971_p1 }
 0x291   :  { %981 = shalt.err (!%p978_p5)
}
 0x292   :  { %788 = dma.vmem_to_hbm [thread:$0]  %s783_s17, 256, %s1380_s9, [#allocation9], %s1007_s19, %s1007_s19, %s1008_s20  }
 0x2f7   :  { %v690_v17 = vpop.xlane.xlu0 %689 }
 0x2f8   :  { %v704_v19 = vmul.f32 0.03125, %v690_v17  ;;  %v693_v11 = vpop.xlane.xlu1 %692 }
 0x2f9   :  { %v705_v20 = vmul.f32 0.03125, %v693_v11 }
 0x2fa   :  { %713 = vst.msk [vmem:[%s1381_s10 + $0x8] sm:$0x3] %vm708_vm4, %v704_v19 }
 0x2fb   :  { %714 = vst.msk [vmem:[%s1381_s10 + $0xa] sm:$0x3] %vm708_vm4, %v705_v20  ;;  %v678_v21 = vpop.xlane.xlu0 %677 }
 0x2fc   :  { %v700_v23 = vmul.f32 0.03125, %v678_v21 }
 0x2fe   :  { %709 = vst.msk [vmem:[%s1381_s10] sm:$0x3] %vm708_vm4, %v700_v23 }
 0x2ff   :  { %v696_v24 = vpop.xlane.xlu0 %695 }
 0x300   :  { %v706_v15 = vmul.f32 0.03125, %v696_v24 }
 0x302   :  { %715 = vst.msk [vmem:[%s1381_s10 + $0xc] sm:$0x3] %vm708_vm4, %v706_v15 }
 0x303   :  { %v684_v18 = vpop.xlane.xlu0 %683  ;;  %v681_v25 = vpop.xlane.xlu1 %680 }
 0x304   :  { %v702_v26 = vmul.f32 0.03125, %v684_v18  ;;  %v701_v27 = vmul.f32 0.03125, %v681_v25 }
 0x306   :  { %711 = vst.msk [vmem:[%s1381_s10 + $0x4] sm:$0x3] %vm708_vm4, %v702_v26  ;;  %710 = vst.msk [vmem:[%s1381_s10 + $0x2] sm:$0x3] %vm708_vm4, %v701_v27 }
 0x307   :  { %v745_v22 = vpop.xlane.xlu0 %744  ;;  %v699_v28 = vpop.xlane.xlu1 %698 }
 0x308   :  { %v755_v29 = vmul.f32 0.03125, %v745_v22  ;;  %v707_v30 = vmul.f32 0.03125, %v699_v28 }
 0x30a   :  { %763 = vst.msk [vmem:[%s1382_s11 + $0xc] sm:$0x3] %vm708_vm4, %v755_v29  ;;  %716 = vst.msk [vmem:[%s1381_s10 + $0xe] sm:$0x3] %vm708_vm4, %v707_v30 }
 0x30b   :  { %v687_v31 = vpop.xlane.xlu1 %686 }
 0x30c   :  { %v703_v34 = vmul.f32 0.03125, %v687_v31 }
 0x30e   :  { %712 = vst.msk [vmem:[%s1381_s10 + $0x6] sm:$0x3] %vm708_vm4, %v703_v34 }
 0x30f   :  { %v748_v35 = vpop.xlane.xlu1 %747 }
 0x310   :  { %v756_v36 = vmul.f32 0.03125, %v748_v35 }
 0x312   :  { %764 = vst.msk [vmem:[%s1382_s11 + $0xe] sm:$0x3] %vm708_vm4, %v756_v36 }
 0x313   :  { %994 = dma.done.wait [#allocation4], 256  }
 0x314   :  { %995 = vsyncadd [#allocation4], 4294967040 }
 0x315   :  { %996 = dma.done.wait [#allocation9], 256  }
 0x316   :  { %997 = vsyncadd [#allocation9], 4294967040 }
 0x317   :  { %803 = vsyncpa [#allocation3], 1 }
 0x318   :  { %804 = vsyncpa [#allocation6], 1 }
 0x319   :  { %805 = vsyncpa [#allocation4], 1 }
 0x31a   :  { %806 = vsyncpa [#allocation9], 1 }

</bundles_post_ra>
